<compile_context>
chip_gen: v7x
topology: tpu7x:2x2x1
jax: 0.10.0
libtpu: 0.0.40
codegen_flags: <defaults>
</compile_context>

<pallas_src>
import functools

import jax
import jax.numpy as jnp
from jax.experimental import pallas as pl
from jax.experimental.pallas import tpu as pltpu


# ----------------------------------------------------------------------------
# Tiling helpers
# ----------------------------------------------------------------------------

def _pick_tile(dim, target, quantum):
    """Largest tile <= target that divides `dim` and is a multiple of `quantum`.

    Falls back to the full dim (single block along that axis) if no such tile
    exists — a full-extent block is always legal w.r.t. the (8,128) rule.
    """
    if dim <= target:
        return dim
    t = (target // quantum) * quantum
    while t >= quantum:
        if dim % t == 0:
            return t
        t -= quantum
    return dim


# ----------------------------------------------------------------------------
# Fused tiled matmul (+bias, +QuickGELU, +residual)
# ----------------------------------------------------------------------------

def _matmul_kernel(*refs, activation, has_bias, has_residual):
    # refs = (x, w, [bias], [residual], out, acc_scratch)
    idx = 0
    x_ref = refs[idx]; idx += 1
    w_ref = refs[idx]; idx += 1
    b_ref = None
    r_ref = None
    if has_bias:
        b_ref = refs[idx]; idx += 1
    if has_residual:
        r_ref = refs[idx]; idx += 1
    o_ref = refs[idx]; idx += 1
    acc_ref = refs[idx]

    k = pl.program_id(2)

    @pl.when(k == 0)
    def _():
        acc_ref[...] = jnp.zeros_like(acc_ref)

    # Keep operands in native dtype (bf16-friendly); MXU accumulates in f32.
    acc_ref[...] += jnp.dot(x_ref[...], w_ref[...],
                            preferred_element_type=jnp.float32)

    @pl.when(k == pl.num_programs(2) - 1)
    def _():
        y = acc_ref[...]
        if has_bias:
            y = y + b_ref[...]                                # bias stays f32
        if activation == "quick_gelu":
            y = y * jax.nn.sigmoid(1.702 * y)                 # f32 VPU/EUP math
        if has_residual:
            y = y + r_ref[...].astype(jnp.float32)            # fused residual add
        o_ref[...] = y.astype(o_ref.dtype)


def pallas_linear(x, w, b=None, activation=None, residual=None,
                  tm=256, tn=256, tk=512):
    """x: (M, K), w: (K, N), b: (N,) or None, residual: (M, N) or None -> (M, N).

    Tile targets (256, 256, 512) keep double-buffered inputs + f32 accumulator
    well under the 32 MiB scoped-VMEM default, so they are safe on v5e/v6e/v7x.
    """
    M, K = x.shape
    Kw, N = w.shape
    assert K == Kw
    tm = _pick_tile(M, tm, 8)
    tn = _pick_tile(N, tn, 128)
    tk = _pick_tile(K, tk, 128)
    grid = (M // tm, N // tn, K // tk)

    in_specs = [
        pl.BlockSpec((tm, tk), lambda i, j, k: (i, k)),
        pl.BlockSpec((tk, tn), lambda i, j, k: (k, j)),
    ]
    args = [x, w]
    if b is not None:
        in_specs.append(pl.BlockSpec((1, tn), lambda i, j, k: (0, j)))
        args.append(b.reshape(1, N).astype(jnp.float32))
    if residual is not None:
        in_specs.append(pl.BlockSpec((tm, tn), lambda i, j, k: (i, j)))
        args.append(residual)

    kernel = functools.partial(_matmul_kernel,
                               activation=activation,
                               has_bias=b is not None,
                               has_residual=residual is not None)
    return pl.pallas_call(
        kernel,
        out_shape=jax.ShapeDtypeStruct((M, N), x.dtype),
        grid_spec=pltpu.PrefetchScalarGridSpec(
            num_scalar_prefetch=0,
            grid=grid,
            in_specs=in_specs,
            out_specs=pl.BlockSpec((tm, tn), lambda i, j, k: (i, j)),
            scratch_shapes=[pltpu.VMEM((tm, tn), jnp.float32)]),
        compiler_params=pltpu.CompilerParams(
            dimension_semantics=("parallel", "parallel", "arbitrary")),
    )(*args)


# ----------------------------------------------------------------------------
# Row-tiled LayerNorm (fp32 math, like the fp16-safe torch LayerNorm)
# ----------------------------------------------------------------------------

def _layernorm_kernel(x_ref, g_ref, b_ref, o_ref):
    x = x_ref[...].astype(jnp.float32)
    mean = jnp.mean(x, axis=-1, keepdims=True)
    var = jnp.mean(jnp.square(x - mean), axis=-1, keepdims=True)
    y = (x - mean) * jax.lax.rsqrt(var + 1e-5)
    y = y * g_ref[...].astype(jnp.float32) + b_ref[...].astype(jnp.float32)
    o_ref[...] = y.astype(o_ref.dtype)


def pallas_layernorm(x2d, gamma, beta, tm=512):
    M, D = x2d.shape
    tm = _pick_tile(M, tm, 8)
    grid = (M // tm,)
    return pl.pallas_call(
        _layernorm_kernel,
        out_shape=jax.ShapeDtypeStruct((M, D), x2d.dtype),
        grid_spec=pltpu.PrefetchScalarGridSpec(
            num_scalar_prefetch=0,
            grid=grid,
            in_specs=[pl.BlockSpec((tm, D), lambda i: (i, 0)),
                      pl.BlockSpec((1, D), lambda i: (0, 0)),
                      pl.BlockSpec((1, D), lambda i: (0, 0))],
            out_specs=pl.BlockSpec((tm, D), lambda i: (i, 0))),
        compiler_params=pltpu.CompilerParams(
            dimension_semantics=("parallel",)),
    )(x2d, gamma.reshape(1, D), beta.reshape(1, D))


# ----------------------------------------------------------------------------
# Batched-head attention (scale + scores + softmax + weighted sum), opt. mask
# ----------------------------------------------------------------------------

def _attention_kernel(*refs, has_mask, scale):
    if has_mask:
        q_ref, k_ref, v_ref, m_ref, o_ref = refs
    else:
        q_ref, k_ref, v_ref, o_ref = refs
        m_ref = None
    q = q_ref[...]                       # (Hb, L, Dh)
    k = k_ref[...]
    v = v_ref[...]
    s = jnp.einsum('hqd,hkd->hqk', q, k,
                   preferred_element_type=jnp.float32) * scale
    if m_ref is not None:
        s = s + m_ref[...].astype(jnp.float32)[None, :, :]
    s = s - jnp.max(s, axis=-1, keepdims=True)
    p = jnp.exp(s)
    p = p * pl.reciprocal(jnp.sum(p, axis=-1, keepdims=True), approx=True)
    o = jnp.einsum('hqk,hkd->hqd', p.astype(v.dtype), v,
                   preferred_element_type=jnp.float32)
    o_ref[...] = o.astype(o_ref.dtype)


def pallas_attention(q, k, v, mask=None, heads_per_block=8):
    """q, k, v: (B*H, L, Dh), mask: (L, L) additive or None -> (B*H, L, Dh).

    The Dh^-0.5 scale is applied inside the kernel (on f32 scores)."""
    BH, L, Dh = q.shape
    hb = _pick_tile(BH, heads_per_block, 1)
    grid = (BH // hb,)
    qkv_spec = pl.BlockSpec((hb, L, Dh), lambda i: (i, 0, 0))
    in_specs = [qkv_spec, qkv_spec, qkv_spec]
    args = [q, k, v]
    if mask is not None:
        in_specs.append(pl.BlockSpec((L, L), lambda i: (0, 0)))
        args.append(mask)
    kernel = functools.partial(_attention_kernel,
                               has_mask=mask is not None,
                               scale=float(Dh) ** -0.5)
    return pl.pallas_call(
        kernel,
        out_shape=jax.ShapeDtypeStruct((BH, L, Dh), q.dtype),
        grid_spec=pltpu.PrefetchScalarGridSpec(
            num_scalar_prefetch=0,
            grid=grid,
            in_specs=in_specs,
            out_specs=pl.BlockSpec((hb, L, Dh), lambda i: (i, 0, 0))),
        compiler_params=pltpu.CompilerParams(
            dimension_semantics=("parallel",)),
    )(*args)


# ----------------------------------------------------------------------------
# Fused CLIP head: L2-normalize both features, split-weight linear, Softmax
# logits = norm(img) @ W_img + norm(txt) @ W_txt + b   (no in-kernel concat)
# ----------------------------------------------------------------------------

def _clip_head_kernel(img_ref, txt_ref, wi_ref, wt_ref, b_ref, o_ref):
    img = img_ref[...].astype(jnp.float32)
    txt = txt_ref[...].astype(jnp.float32)
    img = img * jax.lax.rsqrt(jnp.maximum(
        jnp.sum(img * img, axis=-1, keepdims=True), 1e-12))
    txt = txt * jax.lax.rsqrt(jnp.maximum(
        jnp.sum(txt * txt, axis=-1, keepdims=True), 1e-12))
    logits = (jnp.dot(img, wi_ref[...], preferred_element_type=jnp.float32)
              + jnp.dot(txt, wt_ref[...], preferred_element_type=jnp.float32)
              + b_ref[...])
    logits = logits - jnp.max(logits, axis=-1, keepdims=True)
    p = jnp.exp(logits)
    # exact division here so softmax rows sum to 1 to tight tolerance
    o_ref[...] = (p / jnp.sum(p, axis=-1, keepdims=True)).astype(o_ref.dtype)


def pallas_clip_head(img_feats, txt_feats, w, b):
    """img/txt: (B, E), w: (2E, C), b: (C,) -> softmax probs (B, C)."""
    B, E = img_feats.shape
    C = w.shape[1]
    w_img = w[:E, :].astype(jnp.float32)
    w_txt = w[E:, :].astype(jnp.float32)
    return pl.pallas_call(
        _clip_head_kernel,
        out_shape=jax.ShapeDtypeStruct((B, C), img_feats.dtype),
        grid_spec=pltpu.PrefetchScalarGridSpec(
            num_scalar_prefetch=0,
            grid=(1,),
            in_specs=[pl.BlockSpec((B, E), lambda i: (0, 0)),
                      pl.BlockSpec((B, E), lambda i: (0, 0)),
                      pl.BlockSpec((E, C), lambda i: (0, 0)),
                      pl.BlockSpec((E, C), lambda i: (0, 0)),
                      pl.BlockSpec((1, C), lambda i: (0, 0))],
            out_specs=pl.BlockSpec((B, C), lambda i: (0, 0))),
    )(img_feats, txt_feats, w_img, w_txt,
      b.reshape(1, C).astype(jnp.float32))


# ----------------------------------------------------------------------------
# Transformer / CLIP forward (JAX glue composing the Pallas kernels)
# ----------------------------------------------------------------------------

def residual_attention_block(x, p, n_head, attn_mask):
    """x: (L, N, E) as in PyTorch nn.MultiheadAttention (seq-first)."""
    L, N, E = x.shape
    Dh = E // n_head
    x2d = x.reshape(L * N, E)

    # --- attention branch ---
    h = pallas_layernorm(x2d, p["ln1_g"], p["ln1_b"])
    qkv = pallas_linear(h, p["attn_in_w"].T, p["attn_in_b"])          # (L*N, 3E)
    qkv = qkv.reshape(L, N, 3 * E)
    q, k, v = qkv[..., :E], qkv[..., E:2 * E], qkv[..., 2 * E:]

    # TODO(synk): the (L,N,E)<->(N*H,L,Dh) head split/merge is left as XLA
    # reshape/transpose glue; it could be folded into BlockSpec index_maps.
    def to_heads(t):
        return t.reshape(L, N, n_head, Dh).transpose(1, 2, 0, 3).reshape(N * n_head, L, Dh)

    oh = pallas_attention(to_heads(q), to_heads(k), to_heads(v), attn_mask)
    attn_out = oh.reshape(N, n_head, L, Dh).transpose(2, 0, 1, 3).reshape(L * N, E)
    # out-projection with fused residual add
    x2d = pallas_linear(attn_out, p["attn_out_w"].T, p["attn_out_b"],
                        residual=x2d)

    # --- MLP branch ---
    h2 = pallas_layernorm(x2d, p["ln2_g"], p["ln2_b"])
    h2 = pallas_linear(h2, p["c_fc_w"].T, p["c_fc_b"], activation="quick_gelu")
    # c_proj with fused residual add
    x2d = pallas_linear(h2, p["c_proj_w"].T, p["c_proj_b"], residual=x2d)
    return x2d.reshape(L, N, E)


def encode_image(pixel_values, vp, cfg):
    B = pixel_values.shape[0]
    P = cfg["vision_patch_size"]
    W = cfg["vision_width"]
    g = cfg["image_resolution"] // P
    n_patches = g * g

    # conv1 (kernel == stride == P, no bias) as patch-flatten + matmul
    patches = pixel_values.reshape(B, 3, g, P, g, P).transpose(0, 2, 4, 1, 3, 5)
    patches = patches.reshape(B * n_patches, 3 * P * P)
    conv_w = vp["conv_w"].reshape(W, 3 * P * P)                        # (width, 3*P*P)
    x = pallas_linear(patches, conv_w.T, None).reshape(B, n_patches, W)

    # TODO(synk): cls-token concat + positional-embedding add are cheap XLA glue.
    cls = jnp.broadcast_to(vp["class_emb"][None, None, :], (B, 1, W)).astype(x.dtype)
    x = jnp.concatenate([cls, x], axis=1)                              # (B, n_patches+1, W)
    x = x + vp["pos_emb"][None, :, :]

    Lp = n_patches + 1
    x = pallas_layernorm(x.reshape(B * Lp, W), vp["ln_pre_g"], vp["ln_pre_b"]).reshape(B, Lp, W)
    x = x.transpose(1, 0, 2)                                           # (L, N, E)
    for blk in vp["blocks"]:
        x = residual_attention_block(x, blk, cfg["vision_heads"], None)
    x = x.transpose(1, 0, 2)

    cls_out = pallas_layernorm(x[:, 0, :], vp["ln_post_g"], vp["ln_post_b"])
    return pallas_linear(cls_out, vp["proj"], None)                    # (B, embed_dim)


def encode_text(input_ids, tp, cfg):
    B, L = input_ids.shape
    E = cfg["transformer_width"]
    x = jnp.take(tp["token_emb"], input_ids, axis=0)                   # (B, L, E) - gather glue
    x = x + tp["pos_emb"][None, :, :]
    x = x.transpose(1, 0, 2)
    for blk in tp["blocks"]:
        x = residual_attention_block(x, blk, cfg["transformer_heads"], tp["attn_mask"])
    x = x.transpose(1, 0, 2)
    x = pallas_layernorm(x.reshape(B * L, E), tp["ln_final_g"], tp["ln_final_b"]).reshape(B, L, E)
    eos_pos = jnp.argmax((input_ids == cfg["eos_id"]).astype(jnp.int32), axis=1)
    pooled = x[jnp.arange(B), eos_pos]                                 # (B, E)
    return pallas_linear(pooled, tp["text_proj"], None)                # (B, embed_dim)


def clip_forward(input_ids, pixel_values, params, cfg):
    image_features = encode_image(pixel_values, params["visual"], cfg)
    text_features = encode_text(input_ids, params["text"], cfg)
    # TODO(synk): logit_scale is defined in the module but unused in forward().
    return pallas_clip_head(image_features, text_features,
                            params["new_layer_w"].T, params["new_layer_b"])


# ----------------------------------------------------------------------------
# Deterministic parameter init (shapes match the module; stds from
# initialize_parameters; torch default zeros/ones where applicable)
# ----------------------------------------------------------------------------

def init_clip_params(key, cfg):
    keys = iter(jax.random.split(key, 512))

    def nrm(shape, std):
        return std * jax.random.normal(next(keys), shape, jnp.float32)

    def make_blocks(width, layers):
        proj_std = width ** (-0.5) * (2 * layers) ** (-0.5)
        attn_std = width ** (-0.5)
        fc_std = (2 * width) ** (-0.5)
        blocks = []
        for _ in range(layers):
            blocks.append(dict(
                ln1_g=jnp.ones((width,), jnp.float32),
                ln1_b=jnp.zeros((width,), jnp.float32),
                attn_in_w=nrm((3 * width, width), attn_std),
                attn_in_b=jnp.zeros((3 * width,), jnp.float32),
                attn_out_w=nrm((width, width), proj_std),
                attn_out_b=jnp.zeros((width,), jnp.float32),
                ln2_g=jnp.ones((width,), jnp.float32),
                ln2_b=jnp.zeros((width,), jnp.float32),
                c_fc_w=nrm((4 * width, width), fc_std),
                c_fc_b=nrm((4 * width,), 0.01),
                c_proj_w=nrm((width, 4 * width), proj_std),
                c_proj_b=nrm((width,), 0.01),
            ))
        return blocks

    vw = cfg["vision_width"]
    P = cfg["vision_patch_size"]
    g = cfg["image_resolution"] // P
    scale_v = vw ** (-0.5)
    visual = dict(
        conv_w=nrm((vw, 3, P, P), 0.02),
        class_emb=nrm((vw,), scale_v),
        pos_emb=nrm((g * g + 1, vw), scale_v),
        ln_pre_g=jnp.ones((vw,), jnp.float32),
        ln_pre_b=jnp.zeros((vw,), jnp.float32),
        blocks=make_blocks(vw, cfg["vision_layers"]),
        ln_post_g=jnp.ones((vw,), jnp.float32),
        ln_post_b=jnp.zeros((vw,), jnp.float32),
        proj=nrm((vw, cfg["embed_dim"]), scale_v),
    )

    tw = cfg["transformer_width"]
    L = cfg["context_length"]
    idx = jnp.arange(L)
    causal_mask = jnp.where(idx[None, :] > idx[:, None], -jnp.inf, 0.0).astype(jnp.float32)
    text = dict(
        token_emb=nrm((cfg["vocab_size"], tw), 0.02),
        pos_emb=nrm((L, tw), 0.01),
        blocks=make_blocks(tw, cfg["transformer_layers"]),
        ln_final_g=jnp.ones((tw,), jnp.float32),
        ln_final_b=jnp.zeros((tw,), jnp.float32),
        text_proj=nrm((tw, cfg["embed_dim"]), tw ** (-0.5)),
        attn_mask=causal_mask,
    )

    # new_layer: Linear(2*embed_dim -> 3) + Softmax  (original hardcodes 1024 = 2*512)
    params = dict(
        visual=visual,
        text=text,
        new_layer_w=nrm((3, 2 * cfg["embed_dim"]), 0.05),
        new_layer_b=nrm((3,), 0.01),
        logit_scale=jnp.asarray(jnp.log(1.0 / 0.07), jnp.float32),
    )
    return params


# ----------------------------------------------------------------------------
# Main
# ----------------------------------------------------------------------------

if __name__ == "__main__":
    cfg = dict(
        embed_dim=16,
        image_resolution=16,
        vision_layers=2,
        vision_width=64,
        vision_patch_size=8,
        context_length=8,
        vocab_size=50,
        transformer_width=32,
        transformer_heads=2,
        transformer_layers=2,
        eos_id=3,
    )
    cfg["vision_heads"] = cfg["vision_width"] // 64   # = 1

    key = jax.random.PRNGKey(0)
    pkey, ikey, tkey = jax.random.split(key, 3)
    params = init_clip_params(pkey, cfg)

    B = 2
    pixel_values = jax.random.normal(ikey, (B, 3, cfg["image_resolution"],
                                            cfg["image_resolution"]), jnp.float32)
    input_ids = jax.random.randint(tkey, (B, cfg["context_length"]), 4, cfg["vocab_size"])
    input_ids = input_ids.at[:, -1].set(cfg["eos_id"])   # exactly one EOS per row

    out = clip_forward(input_ids, pixel_values, params, cfg)
    out = jax.block_until_ready(out)

    assert out.shape == (B, 3)
    assert bool(jnp.all(jnp.isfinite(out)))
    assert bool(jnp.allclose(jnp.sum(out, axis=-1), 1.0, atol=1e-5))  # softmax rows sum to 1
    print("KERNEL_OK")
</pallas_src>

<mosaic_0001>
module attributes {stable_mosaic.version = 11 : i64} {
  func.func @_matmul_kernel(%arg0: i32, %arg1: i32, %arg2: i32, %arg3: memref<8x192xf32, #tpu.memory_space<vmem>>, %arg4: memref<192x64xf32, #tpu.memory_space<vmem>>, %arg5: memref<8x64xf32, #tpu.memory_space<vmem>>, %arg6: memref<8x64xf32, #tpu.memory_space<vmem>>) attributes {dimension_semantics = [#tpu.dimension_semantics<parallel>, #tpu.dimension_semantics<parallel>, #tpu.dimension_semantics<arbitrary>], iteration_bounds = array<i64: 1, 1, 1>, scalar_prefetch = 0 : i64, scratch_operands = 1 : i64, tpu.core_type = #tpu.core_type<tc>, window_params = [{transform_indices = @transform_0, window_bounds = array<i64: 8, 192>}, {transform_indices = @transform_1, window_bounds = array<i64: 192, 64>}, {transform_indices = @transform_2, window_bounds = array<i64: 8, 64>}]} {
    %c0_i32 = arith.constant 0 : i32
    %0 = arith.cmpi eq, %arg2, %c0_i32 : i32
    %1 = arith.extui %0 : i1 to i32
    %c0_i32_0 = arith.constant 0 : i32
    %2 = arith.cmpi ne, %1, %c0_i32_0 : i32
    scf.if %2 {
      %cst_10 = arith.constant 0.000000e+00 : f32
      %12 = vector.broadcast %cst_10 : f32 to vector<8x64xf32>
      %c0_11 = arith.constant 0 : index
      %c0_12 = arith.constant 0 : index
      %13 = vector.load %arg6[%c0_11, %c0_12] : memref<8x64xf32, #tpu.memory_space<vmem>>, vector<8x64xf32>
      tpu.vector_store %arg6[%c0_11, %c0_12], %12 {strides = array<i32>} : memref<8x64xf32, #tpu.memory_space<vmem>>, vector<8x64xf32>,
    } else {
    }
    %c0 = arith.constant 0 : index
    %c0_1 = arith.constant 0 : index
    %3 = vector.load %arg6[%c0, %c0_1] : memref<8x64xf32, #tpu.memory_space<vmem>>, vector<8x64xf32>
    %c0_2 = arith.constant 0 : index
    %c0_3 = arith.constant 0 : index
    %4 = vector.load %arg3[%c0_2, %c0_3] : memref<8x192xf32, #tpu.memory_space<vmem>>, vector<8x192xf32>
    %c0_4 = arith.constant 0 : index
    %c0_5 = arith.constant 0 : index
    %5 = vector.load %arg4[%c0_4, %c0_5] : memref<192x64xf32, #tpu.memory_space<vmem>>, vector<192x64xf32>
    %cst = arith.constant dense<0.000000e+00> : vector<8x64xf32>
    %6 = tpu.matmul %4, %5, %cst {dimension_numbers = #tpu.dot_dimension_numbers<[1], [0], [0], [1], [0, 0, 1, 1], [], []>} : vector<8x192xf32>, vector<192x64xf32>, vector<8x64xf32> -> vector<8x64xf32>
    %7 = arith.addf %3, %6 : vector<8x64xf32>
    %c0_6 = arith.constant 0 : index
    %c0_7 = arith.constant 0 : index
    %8 = vector.load %arg6[%c0_6, %c0_7] : memref<8x64xf32, #tpu.memory_space<vmem>>, vector<8x64xf32>
    tpu.vector_store %arg6[%c0_6, %c0_7], %7 {strides = array<i32>} : memref<8x64xf32, #tpu.memory_space<vmem>>, vector<8x64xf32>,
    %c0_i32_8 = arith.constant 0 : i32
    %9 = arith.cmpi eq, %arg2, %c0_i32_8 : i32
    %10 = arith.extui %9 : i1 to i32
    %c0_i32_9 = arith.constant 0 : i32
    %11 = arith.cmpi ne, %10, %c0_i32_9 : i32
    scf.if %11 {
      %c0_10 = arith.constant 0 : index
      %c0_11 = arith.constant 0 : index
      %12 = vector.load %arg6[%c0_10, %c0_11] : memref<8x64xf32, #tpu.memory_space<vmem>>, vector<8x64xf32>
      %c0_12 = arith.constant 0 : index
      %c0_13 = arith.constant 0 : index
      %13 = vector.load %arg5[%c0_12, %c0_13] : memref<8x64xf32, #tpu.memory_space<vmem>>, vector<8x64xf32>
      tpu.vector_store %arg5[%c0_12, %c0_13], %12 {strides = array<i32>} : memref<8x64xf32, #tpu.memory_space<vmem>>, vector<8x64xf32>,
    } else {
    }
    return
  }
  func.func @transform_0(%arg0: i32, %arg1: i32, %arg2: i32) -> (i32, i32) {
    %c0_i32 = arith.constant 0 : i32
    return %arg0, %arg2 : i32, i32
  }
  func.func @transform_1(%arg0: i32, %arg1: i32, %arg2: i32) -> (i32, i32) {
    %c0_i32 = arith.constant 0 : i32
    return %arg2, %arg1 : i32, i32
  }
  func.func @transform_2(%arg0: i32, %arg1: i32, %arg2: i32) -> (i32, i32) {
    %c0_i32 = arith.constant 0 : i32
    return %arg0, %arg1 : i32, i32
  }
}

</mosaic_0001>

<bundles_post_ra>
// kernel: tpu_custom_call.1
= control target key start
LH: loop header
LB: loop body
LE: loop exit
PB: predicated region body
PF: predicated region fallthrough
CT: control target
= control target key end

     0   :  { %vm16_vm0 = vcmask 523264   ;;  %v204_v3 = vmov 0.0|0.0   ;;  %v205_v6 = vmov 0.0   ;;  %s316_s0 = inlined_call_operand.vmem [shape: f32[8,192], index: 0, kind: input, shape index: {}]   ;;  %s317_s1 = inlined_call_operand.vmem [shape: f32[192,64], index: 1, kind: input, shape index: {}]   ;;  %s318_s2 = inlined_call_operand.hbm [shape: f32[8,64], index: 2, kind: output, shape index: {}]  }
   0x1   :  { %v21_v0 = vld [vmem:[%s317_s1] sm:$0xff]  ;;  %v22_v1 = vld [vmem:[%s317_s1 + $0x8] sm:$0xff]  ;;  %v23_v2 = vld [vmem:[%s317_s1 + $0x10] sm:$0xff]  ;;  %141 = vmatprep.subr.bf16.mxu0 %v204_v3  ;;  %17 = vst.msk [vmem:[#allocation2] sm:$0xff] %vm16_vm0, %v205_v6 }
   0x2   :  { %v142_v4 = vpack.c.bf16 %v22_v1, %v21_v0  ;;  %v24_v5 = vld [vmem:[%s317_s1 + $0x18] sm:$0xff]  ;;  %v25_v8 = vld [vmem:[%s317_s1 + $0x20] sm:$0xff]  ;;  %v26_v9 = vld [vmem:[%s317_s1 + $0x28] sm:$0xff] }
   0x3   :  { %v145_v7 = vpack.c.bf16 %v24_v5, %v23_v2  ;;  %v148_v10 = vpack.c.bf16 %v26_v9, %v25_v8  ;;  %v27_v11 = vld [vmem:[%s317_s1 + $0x30] sm:$0xff]  ;;  %v28_v12 = vld [vmem:[%s317_s1 + $0x38] sm:$0xff]  ;;  %v20_v13 = vld [vmem:[%s316_s0 + $0x8] sm:$0xff] }
   0x4   :  { %143 = vmatpush1.bf16.msra.mxu0 %v142_v4  ;;  %140 = vmatprep.mubr.msk.f32.mxu0 %vm16_vm0, %v20_v13 }
   0x5   :  { %144 = vmatprep.subr.bf16.mxu0 %v204_v3 }
   0x8   :  { %146 = vmatpush1.bf16.msra.mxu0 %v145_v7 }
   0x9   :  { %147 = vmatprep.subr.bf16.mxu0 %v204_v3 }
   0xa   :  { %7 = vsyncpa [#allocation4], 0  ;;  %v151_v14 = vpack.c.bf16 %v28_v12, %v27_v11  ;;  %v29_v15 = vld [vmem:[%s317_s1 + $0x40] sm:$0xff]  ;;  %v30_v16 = vld [vmem:[%s317_s1 + $0x48] sm:$0xff]  ;;  %s206_s5 = smov [#allocation3]  }
   0xb   :  { %v154_v17 = vpack.c.bf16 %v30_v16, %v29_v15  ;;  %v31_v18 = vld [vmem:[%s317_s1 + $0x50] sm:$0xff]  ;;  %v32_v19 = vld [vmem:[%s317_s1 + $0x58] sm:$0xff]  ;;  %v33_v21 = vld [vmem:[%s317_s1 + $0x60] sm:$0xff]  ;;  %s132_s6 = sshll.u32 %s206_s5, 4  ;;  %s133_s6 = int_to_ptr.vmem [resolvable:$true] %s132_s6 }
   0xc   :  { %149 = vmatpush1.bf16.msra.mxu0 %v148_v10  ;;  %v157_v20 = vpack.c.bf16 %v32_v19, %v31_v18  ;;  %v34_v22 = vld [vmem:[%s317_s1 + $0x68] sm:$0xff]  ;;  %v35_v24 = vld [vmem:[%s317_s1 + $0x70] sm:$0xff]  ;;  %v36_v25 = vld [vmem:[%s317_s1 + $0x78] sm:$0xff]  ;;  %p185_p1 = scmp.lt.s32.totalorder %s133_s6, %s133_s6 }
   0xd   :  { %150 = vmatprep.subr.bf16.mxu0 %v204_v3  ;;  %v160_v23 = vpack.c.bf16 %v34_v22, %v33_v21  ;;  %v163_v26 = vpack.c.bf16 %v36_v25, %v35_v24  ;;  %v37_v27 = vld [vmem:[%s317_s1 + $0x80] sm:$0xff]  ;;  %v38_v28 = vld [vmem:[%s317_s1 + $0x88] sm:$0xff]  ;;  %v39_v30 = vld [vmem:[%s317_s1 + $0x90] sm:$0xff] }
   0xe   :  { %v166_v29 = vpack.c.bf16 %v38_v28, %v37_v27  ;;  %v40_v31 = vld [vmem:[%s317_s1 + $0x98] sm:$0xff]  ;;  %v41_v33 = vld [vmem:[%s317_s1 + $0xa0] sm:$0xff]  ;;  %v42_v34 = vld [vmem:[%s317_s1 + $0xa8] sm:$0xff] }
   0xf   :  { %v169_v32 = vpack.c.bf16 %v40_v31, %v39_v30  ;;  %v172_v35 = vpack.c.bf16 %v42_v34, %v41_v33  ;;  %v43_v36 = vld [vmem:[%s317_s1 + $0xb0] sm:$0xff]  ;;  %v44_v37 = vld [vmem:[%s317_s1 + $0xb8] sm:$0xff]  ;;  %v19_v39 = vld [vmem:[%s316_s0] sm:$0xff]  ;;  %s180_s1 = scalar_lea.vmem %s133_s6, 128 }
  0x10   :  { %152 = vmatpush1.bf16.msra.mxu0 %v151_v14  ;;  %v175_v38 = vpack.c.bf16 %v44_v37, %v43_v36  ;;  %v18_v40 = vld [vmem:[#allocation2] sm:$0xff]  ;;  %p181_p0 = scmp.ne.s32.totalorder %s133_s6, %s180_s1  ;;  %p186_p2 = scmp.lt.s32.totalorder %s180_s1, %s180_s1 }
  0x11   :  { %153 = vmatprep.subr.bf16.mxu0 %v204_v3 }
  0x12   :  { %p187_p3 = por %p186_p2, %p185_p1 }
  0x14   :  { %155 = vmatpush1.bf16.msra.mxu0 %v154_v17  ;;  %p188_p4 = pnand %p187_p3, %p181_p0 }
  0x15   :  { %156 = vmatprep.subr.bf16.mxu0 %v204_v3 }
  0x18   :  { %158 = vmatpush1.bf16.msra.mxu0 %v157_v20 }
  0x19   :  { %159 = vmatprep.subr.bf16.mxu0 %v204_v3 }
  0x1c   :  { %161 = vmatpush1.bf16.msra.mxu0 %v160_v23 }
  0x1d   :  { %162 = vmatprep.subr.bf16.mxu0 %v204_v3 }
  0x20   :  { %164 = vmatpush1.bf16.msra.mxu0 %v163_v26 }
  0x21   :  { %165 = vmatprep.subr.bf16.mxu0 %v204_v3 }
  0x24   :  { %167 = vmatpush1.bf16.msra.mxu0 %v166_v29 }
  0x25   :  { %168 = vmatprep.subr.bf16.mxu0 %v204_v3 }
  0x28   :  { %170 = vmatpush1.bf16.msra.mxu0 %v169_v32 }
  0x29   :  { %171 = vmatprep.subr.bf16.mxu0 %v204_v3 }
  0x2c   :  { %173 = vmatpush1.bf16.msra.mxu0 %v172_v35 }
  0x2d   :  { %174 = vmatprep.subr.bf16.mxu0 %v204_v3 }
  0x30   :  { %176 = vmatpush1.bf16.msra.mxu0 %v175_v38 }
  0x33   :  { %114 = vmatmul.mubr.f32.vlgmr.msra.gmra.mrb[0].mxu0 %v19_v39 }
 0x106   :  { %v115_v41 = vpop.f32.mrb[0].mxu0 }
 0x107   :  { %v119_v42 = vadd.f32 %v115_v41, %v18_v40  ;;  %v117_v43 = vpop.f32.mrb[1].mxu0 }
 0x109   :  { %120 = vst.msk [vmem:[#allocation2] sm:$0xff] %vm16_vm0, %v119_v42 }
 0x110   :  { %v124_v44 = vld [vmem:[#allocation2] sm:$0xff] }
 0x111   :  { %125 = vst.msk [vmem:[#allocation3] sm:$0xff] %vm16_vm0, %v124_v44 }
 0x112   :  { %191 = shalt.err (!%p188_p4)
}
 0x113   :  { %s192_s8 = scalar_lea.hbm %s318_s2, 128 }
 0x114   :  { %p193_p5 = scmp.ne.s32.totalorder %s318_s2, %s192_s8  ;;  %p196_p6 = scmp.lt.u32.totalorder %s192_s8, %s318_s2 }
 0x116   :  { %p198_p7 = pnand %p196_p6, %p193_p5 }
 0x118   :  { %201 = shalt.err (!%p198_p7)
}
 0x119   :  { %135 = dma.vmem_to_hbm [thread:$0]  %s133_s6, 128, %s318_s2, [#allocation4]  }
 0x11a   :  { %202 = dma.done.wait [#allocation4], 128  }
 0x11b   :  { %203 = vsyncadd [#allocation4], 4294967168 }
 0x11c   :  { %139 = vsyncpa [#allocation4], 1 }

</bundles_post_ra>
